<compile_context>
chip_gen: v7x
topology: tpu7x:2x2x1
jax: 0.10.0
libtpu: 0.0.40
codegen_flags: <defaults>
</compile_context>

<pallas_src>
import jax
import jax.numpy as jnp
from jax.experimental import pallas as pl
from jax.experimental.pallas import tpu as pltpu

LANE = 128
# Target per-buffer block size. Pipeline holds ~4x this (in + out, each
# double-buffered): 4 MiB blocks -> ~16 MiB VMEM.
TARGET_BLOCK_BYTES = 4 * 1024 * 1024
# Tensors larger than this get at least 2 grid tiles (v7x megacore split).
MIN_SPLIT_BYTES = 2 * 1024 * 1024


def _relu_kernel(x_ref, o_ref):
    # Pure elementwise VPU op on a lane-dense (block_rows, 128) tile.
    o_ref[...] = jnp.maximum(x_ref[...], 0)


def _round_up(a, b):
    return ((a + b - 1) // b) * b


def relu(x):
    """Pallas equivalent of torch.nn.functional.relu(x) for any-shaped input."""
    orig_shape = x.shape
    dtype = x.dtype
    total = x.size

    if total == 0:
        return x

    itemsize = jnp.dtype(dtype).itemsize
    # Sublane granularity depends on dtype packing (f32: 8, bf16: 16, int8: 32).
    sublane = 8 * max(1, 4 // itemsize)
    tile_elems = sublane * LANE

    # Flatten to a lane-dense (rows, 128) layout. Only pad the sub-tile tail
    # (< sublane*128 elements, i.e. a few KiB); aligned sizes are zero-copy.
    flat = x.reshape(-1)
    padded_total = _round_up(total, tile_elems)
    padded = padded_total != total
    if padded:
        flat = jnp.pad(flat, (0, padded_total - total))  # zeros are ReLU-safe
    rows = padded_total // LANE
    x2d = flat.reshape(rows, LANE)

    # Byte-sized blocks: constant per-step DMA across dtypes.
    target_rows = max(
        sublane, (TARGET_BLOCK_BYTES // (LANE * itemsize)) // sublane * sublane
    )
    if rows > target_rows:
        block_rows = target_rows
    elif total * itemsize > MIN_SPLIT_BYTES and rows >= 2 * sublane:
        # Mid-size tensor: force >= 2 tiles so both v7x TensorCores get work.
        block_rows = _round_up(pl.cdiv(rows, 2), sublane)
    else:
        block_rows = rows

    grid = (pl.cdiv(rows, block_rows),)  # last block may be ragged; writes masked

    out2d = pl.pallas_call(
        _relu_kernel,
        out_shape=jax.ShapeDtypeStruct((rows, LANE), dtype),
        grid_spec=pltpu.PrefetchScalarGridSpec(
            num_scalar_prefetch=0,
            grid=grid,
            in_specs=[pl.BlockSpec((block_rows, LANE), lambda i: (i, 0))],
            out_specs=pl.BlockSpec((block_rows, LANE), lambda i: (i, 0)),
        ),
        compiler_params=pltpu.CompilerParams(
            dimension_semantics=("parallel",),
            vmem_limit_bytes=32 * 1024 * 1024,  # > v5e's 16 MiB default cap
        ),
    )(x2d)

    out_flat = out2d.reshape(-1)
    if padded:
        out_flat = out_flat[:total]
    return out_flat.reshape(orig_shape)


if __name__ == "__main__":
    key = jax.random.PRNGKey(0)

    # Small 4-D activation tensor consistent with the module's forward.
    N, C, H, W = 2, 4, 16, 16
    x = jax.random.normal(key, (N, C, H, W), dtype=jnp.float32)

    out = relu(x)
    out = jax.block_until_ready(out)

    # Correctness check against plain JAX relu (same semantics as F.relu).
    ref = jnp.maximum(x, 0.0)
    assert out.shape == x.shape
    assert out.dtype == x.dtype
    assert jnp.array_equal(out, ref)

    print("KERNEL_OK")
</pallas_src>

<mosaic_0001>
module attributes {stable_mosaic.version = 11 : i64} {
  func.func @_relu_kernel(%arg0: i32, %arg1: memref<16x128xf32, #tpu.memory_space<vmem>>, %arg2: memref<16x128xf32, #tpu.memory_space<vmem>>) attributes {dimension_semantics = [#tpu.dimension_semantics<parallel>], iteration_bounds = array<i64: 1>, scalar_prefetch = 0 : i64, scratch_operands = 0 : i64, tpu.core_type = #tpu.core_type<tc>, window_params = [{transform_indices = @transform_0, window_bounds = array<i64: 16, 128>}, {transform_indices = @transform_1, window_bounds = array<i64: 16, 128>}]} {
    %c0 = arith.constant 0 : index
    %c0_0 = arith.constant 0 : index
    %0 = vector.load %arg1[%c0, %c0_0] : memref<16x128xf32, #tpu.memory_space<vmem>>, vector<16x128xf32>
    %cst = arith.constant 0.000000e+00 : f32
    %1 = vector.broadcast %cst : f32 to vector<16x128xf32>
    %2 = arith.maximumf %0, %1 : vector<16x128xf32>
    %c0_1 = arith.constant 0 : index
    %c0_2 = arith.constant 0 : index
    %3 = vector.load %arg2[%c0_1, %c0_2] : memref<16x128xf32, #tpu.memory_space<vmem>>, vector<16x128xf32>
    tpu.vector_store %arg2[%c0_1, %c0_2], %2 {strides = array<i32>} : memref<16x128xf32, #tpu.memory_space<vmem>>, vector<16x128xf32>,
    return
  }
  func.func @transform_0(%arg0: i32) -> (i32, i32) {
    %c0_i32 = arith.constant 0 : i32
    %c0_i32_0 = arith.constant 0 : i32
    return %arg0, %c0_i32 : i32, i32
  }
  func.func @transform_1(%arg0: i32) -> (i32, i32) {
    %c0_i32 = arith.constant 0 : i32
    %c0_i32_0 = arith.constant 0 : i32
    return %arg0, %c0_i32 : i32, i32
  }
}

</mosaic_0001>

<bundles_post_ra>
// kernel: tpu_custom_call.1
= control target key start
LH: loop header
LB: loop body
LE: loop exit
PB: predicated region body
PF: predicated region fallthrough
CT: control target
= control target key end

     0   :  { %6 = vsyncpa [#allocation3], 0  ;;  %s136_s0 = inlined_call_operand.hbm [shape: f32[16,128], index: 0, kind: input, shape index: {}]   ;;  %s137_s1 = inlined_call_operand.hbm [shape: f32[16,128], index: 1, kind: output, shape index: {}]  }
   0x1   :  { %7 = vsyncpa [#allocation4], 0  ;;  %s98_s6 = smov [#allocation2]   ;;  %s50_s10 = scalar_lea.hbm %s136_s0, 256 }
   0x2   :  { %s13_s7 = sshll.u32 %s98_s6, 4  ;;  %p51_p0 = scmp.ne.s32.totalorder %s136_s0, %s50_s10  ;;  %s14_s7 = int_to_ptr.vmem [resolvable:$true] %s13_s7 }
   0x3   :  { %p54_p1 = scmp.lt.u32.totalorder %s50_s10, %s136_s0 }
   0x5   :  { %p56_p2 = pnand %p54_p1, %p51_p0 }
   0x7   :  { %59 = shalt.err (!%p56_p2)
}
   0x8   :  { %s60_s15 = scalar_lea.vmem %s14_s7, 256  ;;  %p65_p4 = scmp.lt.s32.totalorder %s14_s7, %s14_s7 }
   0x9   :  { %p61_p3 = scmp.ne.s32.totalorder %s14_s7, %s60_s15  ;;  %p66_p5 = scmp.lt.s32.totalorder %s60_s15, %s60_s15 }
   0xb   :  { %p67_p6 = por %p66_p5, %p65_p4 }
   0xd   :  { %p68_p7 = pnand %p67_p6, %p61_p3 }
   0xf   :  { %71 = shalt.err (!%p68_p7)
}
  0x10   :  { %s99_s16 = smov 128   ;;  %s100_s17 = smov 8  }
  0x11   :  { %19 = dma.hbm_to_vmem [thread:$0]  %s136_s0, 256, %s14_s7, [#allocation3], %s99_s16, %s99_s16, %s100_s17  }
  0x12   :  { %94 = dma.done.wait [#allocation3], 256  }
  0x13   :  { %95 = vsyncadd [#allocation3], 4294967040  ;;  %s101_s20 = smov [#allocation5]   ;;  %v23_v0 = vld [vmem:[#allocation2] sm:$0xff]  ;;  %v24_v1 = vld [vmem:[#allocation2 + $0x8] sm:$0xff] }
  0x14   :  { %s34_s21 = sshll.u32 %s101_s20, 4  ;;  %v25_v2 = vmax.f32 %v23_v0, 0.0  ;;  %v26_v3 = vmax.f32 %v24_v1, 0.0  ;;  %s35_s21 = int_to_ptr.vmem [resolvable:$true] %s34_s21 }
  0x15   :  { %s72_s22 = scalar_lea.vmem %s35_s21, 256  ;;  %p77_p9 = scmp.lt.s32.totalorder %s35_s21, %s35_s21 }
  0x16   :  { %27 = vst [vmem:[#allocation5] sm:$0xff] %v25_v2  ;;  %28 = vst [vmem:[#allocation5 + $0x8] sm:$0xff] %v26_v3  ;;  %p73_p8 = scmp.ne.s32.totalorder %s35_s21, %s72_s22  ;;  %p78_p10 = scmp.lt.s32.totalorder %s72_s22, %s72_s22 }
  0x18   :  { %p79_p11 = por %p78_p10, %p77_p9 }
  0x1a   :  { %p80_p12 = pnand %p79_p11, %p73_p8 }
  0x1c   :  { %83 = shalt.err (!%p80_p12)
}
  0x1d   :  { %s84_s24 = scalar_lea.hbm %s137_s1, 256 }
  0x1e   :  { %p85_p13 = scmp.ne.s32.totalorder %s137_s1, %s84_s24  ;;  %p88_p0 = scmp.lt.u32.totalorder %s84_s24, %s137_s1 }
  0x20   :  { %p90_p1 = pnand %p88_p0, %p85_p13 }
  0x22   :  { %93 = shalt.err (!%p90_p1)
}
  0x23   :  { %40 = dma.vmem_to_hbm [thread:$0]  %s35_s21, 256, %s137_s1, [#allocation4], %s99_s16, %s99_s16, %s100_s17  }
  0x24   :  { %96 = dma.done.wait [#allocation4], 256  }
  0x25   :  { %97 = vsyncadd [#allocation4], 4294967040 }
  0x26   :  { %44 = vsyncpa [#allocation3], 1 }
  0x27   :  { %45 = vsyncpa [#allocation4], 1 }

</bundles_post_ra>
